<compile_context>
chip_gen: v7x
topology: tpu7x:2x2x1
jax: 0.10.0
libtpu: 0.0.40
codegen_flags: <defaults>
</compile_context>

<pallas_src>
import jax
import jax.numpy as jnp
from jax.experimental import pallas as pl
from jax.experimental.pallas import tpu as pltpu


# -------------------------- Pallas kernels --------------------------

def _assemble_kernel(prefix_ref, ctx_ref, suffix_ref, out_ref):
    # prefix_ref : (CB, N, 1,     D)
    # ctx_ref    : (N,  n_ctx,    D)   resident across the whole grid (constant index_map)
    # suffix_ref : (CB, N, suf,   D)
    # out_ref    : (CB, N, seq,   D)
    cb = out_ref.shape[0]
    n_ctx = ctx_ref.shape[1]
    # Direct slice stores -> plain VMEM copies, no in-kernel concatenate.
    out_ref[:, :, 0:1, :] = prefix_ref[...]
    ctx = ctx_ref[...]
    out_ref[:, :, 1:1 + n_ctx, :] = jnp.broadcast_to(ctx[None], (cb,) + ctx.shape)
    out_ref[:, :, 1 + n_ctx:, :] = suffix_ref[...]


def _fused_linear_kernel(x_ref, w_ref, b_ref, o_ref):
    # One (layer l, d_out-tile j) grid point:  y = x @ W + b, f32 MXU accumulation.
    # x_ref: (1, rows, d_in)  w_ref: (1, d_in, nb)  b_ref: (1, 1, nb)  o_ref: (1, rows, nb)
    acc = jnp.dot(x_ref[0], w_ref[0], preferred_element_type=jnp.float32)
    o_ref[0] = (acc + b_ref[0].astype(jnp.float32)).astype(o_ref.dtype)


# -------------------------- wrappers --------------------------

def assemble_prompts(prefix, ctx, suffix, *, class_block=None):
    """prefix: (n_cls*N, 1, D), ctx: (N, n_ctx, D), suffix: (n_cls*N, S-1-n_ctx, D)
       -> prompts: (n_cls*N, S, D) with prompts[c*N+n] = [prefix[c*N+n]; ctx[n]; suffix[c*N+n]]."""
    n_rows, _, D = prefix.shape
    N, n_ctx, _ = ctx.shape
    suf_len = suffix.shape[1]
    n_cls = n_rows // N
    seq = 1 + n_ctx + suf_len

    # Many classes per grid step to amortize per-step overhead. At real CLIP shapes
    # keep this ~64 on v5e/v6e, ~16-32 on v7x (64 MiB VMEM) with an explicit vmem limit.
    if class_block is None:
        class_block = max(1, min(n_cls, 64))

    prefix4 = prefix.reshape(n_cls, N, 1, D)
    suffix4 = suffix.reshape(n_cls, N, suf_len, D)

    out = pl.pallas_call(
        _assemble_kernel,
        out_shape=jax.ShapeDtypeStruct((n_cls, N, seq, D), prefix.dtype),
        grid=(pl.cdiv(n_cls, class_block),),
        in_specs=[
            pl.BlockSpec((class_block, N, 1, D), lambda c: (c, 0, 0, 0)),
            # Constant block index -> ctx is DMA'd once and stays resident in VMEM.
            pl.BlockSpec((N, n_ctx, D), lambda c: (0, 0, 0)),
            pl.BlockSpec((class_block, N, suf_len, D), lambda c: (c, 0, 0, 0)),
        ],
        out_specs=pl.BlockSpec((class_block, N, seq, D), lambda c: (c, 0, 0, 0)),
        compiler_params=pltpu.CompilerParams(
            dimension_semantics=("parallel",)),
    )(prefix4, ctx, suffix4)
    return out.reshape(n_rows, seq, D)


def fused_linear(x, w, b, *, n_block=None):
    """x: (L, rows, d_in), w: (L, d_in, d_out), b: (L, d_out) -> (L, rows, d_out).
       One pallas_call for ALL projection layers (self.proj + compound clones)."""
    L, rows, d_in = x.shape
    d_out = w.shape[-1]
    if n_block is None:
        # Small d_out: one tile.  Production (d_out=768): 256 on v6e/v7x, 128 on v5e.
        n_block = d_out if d_out <= 512 else 256
    n_block = min(n_block, d_out)

    return pl.pallas_call(
        _fused_linear_kernel,
        out_shape=jax.ShapeDtypeStruct((L, rows, d_out), x.dtype),
        grid=(L, pl.cdiv(d_out, n_block)),
        in_specs=[
            pl.BlockSpec((1, rows, d_in), lambda l, j: (l, 0, 0)),
            pl.BlockSpec((1, d_in, n_block), lambda l, j: (l, 0, j)),
            pl.BlockSpec((1, 1, n_block), lambda l, j: (l, 0, j)),
        ],
        out_specs=pl.BlockSpec((1, rows, n_block), lambda l, j: (l, 0, j)),
        compiler_params=pltpu.CompilerParams(
            dimension_semantics=("parallel", "parallel")),
    )(x, w, b.reshape(L, 1, d_out))


def multi_modal_prompt_learner_forward(params):
    """Mirrors MultiModalPromptLearner.forward()."""
    ctx = params["ctx"]                         # (N, n_ctx, D)
    prefix = params["token_prefix"]             # (n_cls*N, 1, D)
    suffix = params["token_suffix"]             # (n_cls*N, S-1-n_ctx, D)
    compound_prompts_text = params["compound_prompts_text"]   # list of (N, n_ctx, D)
    N, n_ctx, D = ctx.shape
    rows = N * n_ctx

    # (1) prompts = cat([prefix, expand(ctx), suffix], dim=1)   -- single pallas_call.
    prompts = assemble_prompts(prefix, ctx, suffix)

    # (2)+(3) self.proj(ctx) and every compound projection, fused into ONE pallas_call
    #         by stacking along a leading layer axis (valid for identical or diverged
    #         deepcopy'd weights; all layers are Linear(ctx_dim, 768) in the module).
    xs = jnp.stack([ctx.reshape(rows, D)]
                   + [cpt.reshape(rows, D) for cpt in compound_prompts_text])
    ws = jnp.stack([params["proj_w"]] + list(params["compound_proj_w"]))
    bs = jnp.stack([params["proj_b"]] + list(params["compound_proj_b"]))
    y = fused_linear(xs, ws, bs)                 # (L, rows, d_out)
    d_out = ws.shape[-1]

    proj_ctx = y[0].reshape(N, n_ctx, d_out)
    visual_deep_prompts = [y[i + 1].reshape(N, n_ctx, d_out)
                           for i in range(len(compound_prompts_text))]

    return prompts, proj_ctx, compound_prompts_text, visual_deep_prompts


# -------------------------- reference (pure JAX, f32) --------------------------

def _reference_forward(params):
    f32 = jnp.float32
    ctx = params["ctx"].astype(f32)
    prefix = params["token_prefix"].astype(f32)
    suffix = params["token_suffix"].astype(f32)
    N, n_ctx, D = ctx.shape
    n_rows = prefix.shape[0]
    n_cls = n_rows // N
    ctx_exp = jnp.broadcast_to(ctx[None], (n_cls, N, n_ctx, D)).reshape(n_rows, n_ctx, D)
    prompts = jnp.concatenate([prefix, ctx_exp, suffix], axis=1)
    proj = (ctx.reshape(N * n_ctx, D) @ params["proj_w"].astype(f32)
            + params["proj_b"].astype(f32)).reshape(N, n_ctx, -1)
    vdp = []
    for i, cpt in enumerate(params["compound_prompts_text"]):
        y = (cpt.astype(f32).reshape(N * n_ctx, -1) @ params["compound_proj_w"][i].astype(f32)
             + params["compound_proj_b"][i].astype(f32))
        vdp.append(y.reshape(N, n_ctx, -1))
    return prompts, proj, vdp


# -------------------------- main --------------------------

if __name__ == "__main__":
    # Small, module-consistent shapes:
    #   n_cls classes, N prompt sets, n_ctx context tokens,
    #   ctx_dim = text width (512 in CLIP -> 128 here),
    #   proj_dim = visual width (768 in CLIP -> 256 here),
    #   seq_len  = tokenized prompt length (77 in CLIP -> 16 here).
    n_cls, N, n_ctx = 3, 2, 4
    ctx_dim, proj_dim, seq_len = 128, 256, 16
    depth = 3                            # compound_prompts_depth -> depth-1 extra layers
    suffix_len = seq_len - 1 - n_ctx
    dt = jnp.bfloat16                    # faithful to the original .half()

    key = jax.random.PRNGKey(0)
    ks = jax.random.split(key, 10)

    # nn.init.normal_(std=0.02) for ctx and compound prompts.
    ctx = (0.02 * jax.random.normal(ks[0], (N, n_ctx, ctx_dim), jnp.float32)).astype(dt)
    compound_prompts_text = [
        (0.02 * jax.random.normal(jax.random.fold_in(ks[1], d),
                                  (N, n_ctx, ctx_dim), jnp.float32)).astype(dt)
        for d in range(depth - 1)
    ]

    # Frozen CLIP token embeddings for prefix/suffix (synthetic stand-ins).
    token_prefix = jax.random.normal(ks[2], (n_cls * N, 1, ctx_dim), jnp.float32).astype(dt)
    token_suffix = jax.random.normal(ks[3], (n_cls * N, suffix_len, ctx_dim),
                                     jnp.float32).astype(dt)

    # self.proj = nn.Linear(ctx_dim, 768)   (weights stored as (in, out))
    proj_w = (0.02 * jax.random.normal(ks[4], (ctx_dim, proj_dim), jnp.float32)).astype(dt)
    proj_b = (0.02 * jax.random.normal(ks[5], (proj_dim,), jnp.float32)).astype(dt)

    # compound_prompt_projections: deepcopies of one Linear(ctx_dim, 768); they are
    # independent parameters after training, so we give each its own weights here.
    compound_proj_w = [
        (0.02 * jax.random.normal(jax.random.fold_in(ks[6], d),
                                  (ctx_dim, proj_dim), jnp.float32)).astype(dt)
        for d in range(depth - 1)
    ]
    compound_proj_b = [
        (0.02 * jax.random.normal(jax.random.fold_in(ks[7], d),
                                  (proj_dim,), jnp.float32)).astype(dt)
        for d in range(depth - 1)
    ]

    params = dict(
        ctx=ctx,
        token_prefix=token_prefix,
        token_suffix=token_suffix,
        proj_w=proj_w, proj_b=proj_b,
        compound_prompts_text=compound_prompts_text,
        compound_proj_w=compound_proj_w,
        compound_proj_b=compound_proj_b,
    )

    prompts, proj_ctx, cpts, vdp = multi_modal_prompt_learner_forward(params)
    outs = jax.block_until_ready((prompts, proj_ctx, cpts, vdp))

    # ---- sanity check against a pure-JAX f32 reference ----
    r_prompts, r_proj, r_vdp = _reference_forward(params)

    assert outs[0].shape == (n_cls * N, seq_len, ctx_dim)
    assert outs[1].shape == (N, n_ctx, proj_dim)
    assert len(outs[3]) == depth - 1
    assert all(v.shape == (N, n_ctx, proj_dim) for v in outs[3])

    # Assembly is a pure copy of bf16 data -> exact.
    assert jnp.array_equal(outs[0].astype(jnp.float32), r_prompts)
    # Matmuls: bf16 inputs, f32 accumulation, bf16 output -> small tolerance vs f32 ref.
    assert jnp.allclose(outs[1].astype(jnp.float32), r_proj, atol=5e-3, rtol=5e-2)
    for a, b in zip(outs[3], r_vdp):
        assert jnp.allclose(a.astype(jnp.float32), b, atol=5e-3, rtol=5e-2)
    # compound_prompts_text is returned unchanged.
    for a, b in zip(outs[2], compound_prompts_text):
        assert a is b

    print("KERNEL_OK")
</pallas_src>

<mosaic_0001>
module attributes {stable_mosaic.version = 11 : i64} {
  func.func @_assemble_kernel(%arg0: i32, %arg1: memref<3x2x1x128xbf16, #tpu.memory_space<vmem>>, %arg2: memref<2x4x128xbf16, #tpu.memory_space<vmem>>, %arg3: memref<3x2x11x128xbf16, #tpu.memory_space<vmem>>, %arg4: memref<3x2x16x128xbf16, #tpu.memory_space<vmem>>) attributes {dimension_semantics = [#tpu.dimension_semantics<parallel>], iteration_bounds = array<i64: 1>, scalar_prefetch = 0 : i64, scratch_operands = 0 : i64, tpu.core_type = #tpu.core_type<tc>, window_params = [{transform_indices = @transform_0, window_bounds = array<i64: 3, 2, 1, 128>}, {pipeline_mode = #tpu.pipeline_mode<synchronous>, transform_indices = @transform_1, window_bounds = array<i64: 2, 4, 128>}, {transform_indices = @transform_2, window_bounds = array<i64: 3, 2, 11, 128>}, {transform_indices = @transform_3, window_bounds = array<i64: 3, 2, 16, 128>}]} {
    %c0 = arith.constant 0 : index
    %c0_0 = arith.constant 0 : index
    %c0_1 = arith.constant 0 : index
    %c0_2 = arith.constant 0 : index
    %0 = vector.load %arg1[%c0, %c0_0, %c0_1, %c0_2] : memref<3x2x1x128xbf16, #tpu.memory_space<vmem>>, vector<3x2x1x128xbf16>
    %c0_3 = arith.constant 0 : index
    %c0_4 = arith.constant 0 : index
    %c0_5 = arith.constant 0 : index
    %c0_6 = arith.constant 0 : index
    %1 = vector.load %arg4[%c0_3, %c0_4, %c0_5, %c0_6] : memref<3x2x16x128xbf16, #tpu.memory_space<vmem>>, vector<3x2x1x128xbf16>
    tpu.vector_store %arg4[%c0_3, %c0_4, %c0_5, %c0_6], %0 {strides = array<i32>} : memref<3x2x16x128xbf16, #tpu.memory_space<vmem>>, vector<3x2x1x128xbf16>,
    %c0_7 = arith.constant 0 : index
    %c0_8 = arith.constant 0 : index
    %c0_9 = arith.constant 0 : index
    %2 = vector.load %arg2[%c0_7, %c0_8, %c0_9] : memref<2x4x128xbf16, #tpu.memory_space<vmem>>, vector<2x4x128xbf16>
    %3 = vector.shape_cast %2 : vector<2x4x128xbf16> to vector<1x2x4x128xbf16>
    %4 = vector.shape_cast %3 : vector<1x2x4x128xbf16> to vector<1x2x4x128xbf16>
    %5 = vector.broadcast %4 : vector<1x2x4x128xbf16> to vector<3x2x4x128xbf16>
    %c0_10 = arith.constant 0 : index
    %c0_11 = arith.constant 0 : index
    %c1 = arith.constant 1 : index
    %c0_12 = arith.constant 0 : index
    %6 = vector.load %arg4[%c0_10, %c0_11, %c1, %c0_12] : memref<3x2x16x128xbf16, #tpu.memory_space<vmem>>, vector<3x2x4x128xbf16>
    tpu.vector_store %arg4[%c0_10, %c0_11, %c1, %c0_12], %5 {strides = array<i32>} : memref<3x2x16x128xbf16, #tpu.memory_space<vmem>>, vector<3x2x4x128xbf16>,
    %c0_13 = arith.constant 0 : index
    %c0_14 = arith.constant 0 : index
    %c0_15 = arith.constant 0 : index
    %c0_16 = arith.constant 0 : index
    %7 = vector.load %arg3[%c0_13, %c0_14, %c0_15, %c0_16] : memref<3x2x11x128xbf16, #tpu.memory_space<vmem>>, vector<3x2x11x128xbf16>
    %c0_17 = arith.constant 0 : index
    %c0_18 = arith.constant 0 : index
    %c5 = arith.constant 5 : index
    %c0_19 = arith.constant 0 : index
    %8 = vector.load %arg4[%c0_17, %c0_18, %c5, %c0_19] : memref<3x2x16x128xbf16, #tpu.memory_space<vmem>>, vector<3x2x11x128xbf16>
    tpu.vector_store %arg4[%c0_17, %c0_18, %c5, %c0_19], %7 {strides = array<i32>} : memref<3x2x16x128xbf16, #tpu.memory_space<vmem>>, vector<3x2x11x128xbf16>,
    return
  }
  func.func @transform_0(%arg0: i32) -> (i32, i32, i32, i32) {
    %c0_i32 = arith.constant 0 : i32
    %c0_i32_0 = arith.constant 0 : i32
    %c0_i32_1 = arith.constant 0 : i32
    %c0_i32_2 = arith.constant 0 : i32
    return %arg0, %c0_i32, %c0_i32_0, %c0_i32_1 : i32, i32, i32, i32
  }
  func.func @transform_1(%arg0: i32) -> (i32, i32, i32) {
    %c0_i32 = arith.constant 0 : i32
    %c0_i32_0 = arith.constant 0 : i32
    %c0_i32_1 = arith.constant 0 : i32
    %c0_i32_2 = arith.constant 0 : i32
    return %c0_i32, %c0_i32_0, %c0_i32_1 : i32, i32, i32
  }
  func.func @transform_2(%arg0: i32) -> (i32, i32, i32, i32) {
    %c0_i32 = arith.constant 0 : i32
    %c0_i32_0 = arith.constant 0 : i32
    %c0_i32_1 = arith.constant 0 : i32
    %c0_i32_2 = arith.constant 0 : i32
    return %arg0, %c0_i32, %c0_i32_0, %c0_i32_1 : i32, i32, i32, i32
  }
  func.func @transform_3(%arg0: i32) -> (i32, i32, i32, i32) {
    %c0_i32 = arith.constant 0 : i32
    %c0_i32_0 = arith.constant 0 : i32
    %c0_i32_1 = arith.constant 0 : i32
    %c0_i32_2 = arith.constant 0 : i32
    return %arg0, %c0_i32, %c0_i32_0, %c0_i32_1 : i32, i32, i32, i32
  }
}

</mosaic_0001>

<bundles_post_ra>
// kernel: tpu_custom_call.1
= control target key start
LH: loop header
LB: loop body
LE: loop exit
PB: predicated region body
PF: predicated region fallthrough
CT: control target
= control target key end

     0   :  { %vm21_vm0 = vcmask 1040384   ;;  %vm22_vm1 = vsmask.f32 256  ;;  %vm76_vm2 = vcmask 1042432   ;;  %v24_v2 = vld [vmem:[#allocation2] sm:$0x1]  ;;  %s473_s0 = inlined_call_operand.vmem [shape: bf16[3,2,1,128], index: 0, kind: input, shape index: {}]   ;;  %s474_s1 = inlined_call_operand.vmem [shape: bf16[2,4,128], index: 1, kind: input, shape index: {}]   ;;  %s475_s2 = inlined_call_operand.vmem [shape: bf16[3,2,11,128], index: 2, kind: input, shape index: {}]   ;;  %s476_s3 = inlined_call_operand.hbm [shape: bf16[3,2,16,128], index: 3, kind: output, shape index: {}]  }
   0x1   :  { %v15_v0 = vld [vmem:[%s473_s0] sm:$0x1]  ;;  %vm330_vm3 = vmand %vm21_vm0, %vm22_vm1  ;;  %v16_v3 = vld [vmem:[%s473_s0 + $0x1] sm:$0x1]  ;;  %vm77_vm4 = vsmask.f32 2306 }
   0x2   :  { %v25_v4 = vsel %vm330_vm3, %v15_v0, %v24_v2  ;;  %v27_v5 = vld [vmem:[#allocation2 + $0x8] sm:$0x1]  ;;  %v17_v6 = vld [vmem:[%s473_s0 + $0x2] sm:$0x1]  ;;  %v30_v7 = vld [vmem:[#allocation2 + $0x10] sm:$0x1] }
   0x3   :  { %26 = vst [vmem:[#allocation2] sm:$0x1] %v25_v4  ;;  %v28_v8 = vsel %vm330_vm3, %v16_v3, %v27_v5  ;;  %v31_v9 = vsel %vm330_vm3, %v17_v6, %v30_v7  ;;  %v18_v10 = vld [vmem:[%s473_s0 + $0x3] sm:$0x1]  ;;  %v33_v11 = vld [vmem:[#allocation2 + $0x18] sm:$0x1]  ;;  %vm375_vm8 = vmand %vm76_vm2, %vm77_vm4 }
   0x4   :  { %v19_v12 = vld [vmem:[%s473_s0 + $0x4] sm:$0x1]  ;;  %29 = vst [vmem:[#allocation2 + $0x8] sm:$0x1] %v28_v8  ;;  %32 = vst [vmem:[#allocation2 + $0x10] sm:$0x1] %v31_v9  ;;  %v34_v13 = vsel %vm330_vm3, %v18_v10, %v33_v11 }
   0x5   :  { %v36_v14 = vld [vmem:[#allocation2 + $0x20] sm:$0x1]  ;;  %v20_v15 = vld [vmem:[%s473_s0 + $0x5] sm:$0x1]  ;;  %v39_v16 = vld [vmem:[#allocation2 + $0x28] sm:$0x1] }
   0x6   :  { %35 = vst [vmem:[#allocation2 + $0x18] sm:$0x1] %v34_v13  ;;  %v37_v17 = vsel %vm330_vm3, %v19_v12, %v36_v14  ;;  %v40_v18 = vsel %vm330_vm3, %v20_v15, %v39_v16  ;;  %v275_v19 = vld.sshfl [vmem:[%s474_s1] sm:$0x3 pattern:$0x76325410] }
   0x7   :  { %v97_v20 = vld [vmem:[%s475_s2] sm:$0xf]  ;;  %38 = vst [vmem:[#allocation2 + $0x20] sm:$0x1] %v37_v17  ;;  %41 = vst [vmem:[#allocation2 + $0x28] sm:$0x1] %v40_v18 }
   0x8   :  { %v61_v21 = vshrl.u32 %v275_v19, 16  ;;  %v64_v22 = vshll.u32 %v275_v19, 16  ;;  %v276_v23 = vld.sshfl [vmem:[%s474_s1 + $0x2] sm:$0x3 pattern:$0x76325410] }
   0x9   :  { %v68_v24 = vshrl.u32 %v276_v23, 16  ;;  %v71_v25 = vshll.u32 %v276_v23, 16  ;;  %v113_v26 = vshrl.u32 %v97_v20, 16  ;;  %v116_v27 = vshll.u32 %v97_v20, 16  ;;  %v98_v28 = vld [vmem:[%s475_s2 + $0x4] sm:$0x3] }
   0xa   :  { %v63_v29 = vrot.slane %v61_v21, 7  ;;  %vm232_vm5 = vcmask 1043458   ;;  %vm233_vm6 = vsmask.f32 7946  ;;  %vm109_vm7 = vsmask.f32 2304 }
   0xb   :  { %v70_v31 = vrot.slane %v68_v24, 7  ;;  %v115_v32 = vrot.slane %v113_v26, 5  ;;  %v118_v33 = vrot.slane %v116_v27, 6  ;;  %vm110_vm9 = vsmask.f32 6416  ;;  %vm422_vm11 = vmand %vm232_vm5, %vm233_vm6 }
   0xc   :  { %v66_v34 = vor.u32 %v64_v22, %v63_v29  ;;  %v79_v35 = vld [vmem:[#allocation2] sm:$0x7]  ;;  %v122_v36 = vshrl.u32 %v98_v28, 16  ;;  %v125_v37 = vshll.u32 %v98_v28, 16  ;;  %v99_v38 = vld [vmem:[%s475_s2 + $0x8] sm:$0xf]  ;;  %vm397_vm10 = vmor %vm109_vm7, %vm110_vm9 }
   0xd   :  { %v73_v39 = vor.u32 %v71_v25, %v70_v31  ;;  %v82_v40 = vld [vmem:[#allocation2 + $0x8] sm:$0x7]  ;;  %v85_v41 = vld [vmem:[#allocation2 + $0x10] sm:$0x7]  ;;  %v382_v42 = vor.u32 %v118_v33, %v115_v32  ;;  %v131_v43 = vshrl.u32 %v99_v38, 16  ;;  %v134_v44 = vshll.u32 %v99_v38, 16 }
   0xe   :  { %v80_v45 = vsel %vm375_vm8, %v66_v34, %v79_v35  ;;  %v86_v46 = vsel %vm375_vm8, %v66_v34, %v85_v41  ;;  %v88_v47 = vld [vmem:[#allocation2 + $0x18] sm:$0x7]  ;;  %v124_v48 = vrot.slane %v122_v36, 5  ;;  %v127_v49 = vrot.slane %v125_v37, 6  ;;  %v100_v50 = vld [vmem:[%s475_s2 + $0xc] sm:$0x3] }
   0xf   :  { %81 = vst [vmem:[#allocation2] sm:$0x7] %v80_v45  ;;  %v83_v51 = vsel %vm375_vm8, %v73_v39, %v82_v40  ;;  %87 = vst [vmem:[#allocation2 + $0x10] sm:$0x7] %v86_v46  ;;  %v89_v52 = vsel %vm375_vm8, %v73_v39, %v88_v47  ;;  %v91_v53 = vld [vmem:[#allocation2 + $0x20] sm:$0x7] }
  0x10   :  { %v94_v54 = vld [vmem:[#allocation2 + $0x28] sm:$0x7]  ;;  %v120_v56 = vrot.slane %v382_v42, 4  ;;  %v133_v57 = vrot.slane %v131_v43, 5  ;;  %84 = vst [vmem:[#allocation2 + $0x8] sm:$0x7] %v83_v51  ;;  %v92_v58 = vsel %vm375_vm8, %v66_v34, %v91_v53  ;;  %v128_v60 = vor.u32 %v127_v49, %v124_v48 }
  0x11   :  { %90 = vst [vmem:[#allocation2 + $0x18] sm:$0x7] %v89_v52  ;;  %v95_v59 = vsel %vm375_vm8, %v73_v39, %v94_v54  ;;  %v136_v61 = vrot.slane %v134_v44, 6  ;;  %v101_v62 = vld [vmem:[%s475_s2 + $0x10] sm:$0xf]  ;;  %v140_v0 = vshrl.u32 %v100_v50, 16 }
  0x12   :  { %v102_v63 = vld [vmem:[%s475_s2 + $0x14] sm:$0x3]  ;;  %93 = vst [vmem:[#allocation2 + $0x20] sm:$0x7] %v92_v58  ;;  %96 = vst [vmem:[#allocation2 + $0x28] sm:$0x7] %v95_v59  ;;  %v129_v5 = vsel %vm397_vm10, %v120_v56, %v128_v60 }
  0x13   :  { %v143_v1 = vshll.u32 %v100_v50, 16  ;;  %v149_v2 = vshrl.u32 %v101_v62, 16  ;;  %v152_v3 = vshll.u32 %v101_v62, 16  ;;  %v103_v4 = vld [vmem:[%s475_s2 + $0x18] sm:$0xf]  ;;  %v137_v6 = vor.u32 %v136_v61, %v133_v57 }
  0x14   :  { %v158_v7 = vshrl.u32 %v102_v63, 16  ;;  %v161_v8 = vshll.u32 %v102_v63, 16  ;;  %v104_v9 = vld [vmem:[%s475_s2 + $0x1c] sm:$0x3]  ;;  %238 = vst [vmem:[#allocation2 + $0x4] sm:$0xf] %v129_v5 }
  0x15   :  { %v142_v10 = vrot.slane %v140_v0, 5  ;;  %v145_v11 = vrot.slane %v143_v1, 6  ;;  %v151_v12 = vrot.slane %v149_v2, 5  ;;  %v154_v13 = vrot.slane %v152_v3, 6  ;;  %v105_v19 = vld [vmem:[%s475_s2 + $0x20] sm:$0xf] }
  0x16   :  { %v138_v15 = vrot.slane %v137_v6, 4  ;;  %v160_v16 = vrot.slane %v158_v7, 5  ;;  %v163_v17 = vrot.slane %v161_v8, 6  ;;  %v167_v18 = vshrl.u32 %v103_v4, 16  ;;  %v106_v24 = vld [vmem:[%s475_s2 + $0x24] sm:$0x3] }
  0x17   :  { %v146_v20 = vor.u32 %v145_v11, %v142_v10  ;;  %v155_v21 = vor.u32 %v154_v13, %v151_v12  ;;  %v170_v22 = vshll.u32 %v103_v4, 16  ;;  %v176_v23 = vshrl.u32 %v104_v9, 16 }
  0x18   :  { %8 = vsyncpa [#allocation3], 0  ;;  %v235_v25 = vld [vmem:[#allocation2] sm:$0xc]  ;;  %v243_v26 = vld [vmem:[#allocation2 + $0x10] sm:$0xc]  ;;  %v164_v27 = vor.u32 %v163_v17, %v160_v16 }
  0x19   :  { %v169_v28 = vrot.slane %v167_v18, 5  ;;  %v179_v29 = vshll.u32 %v104_v9, 16  ;;  %v236_v30 = vsel %vm422_vm11, %v382_v42, %v235_v25  ;;  %v239_v31 = vld [vmem:[#allocation2 + $0x8] sm:$0xc]  ;;  %v147_v32 = vsel %vm397_vm10, %v138_v15, %v146_v20  ;;  %v247_v41 = vld [vmem:[#allocation2 + $0x18] sm:$0xc] }
  0x1a   :  { %v244_v33 = vsel %vm422_vm11, %v155_v21, %v243_v26  ;;  %v156_v34 = vrot.slane %v155_v21, 4  ;;  %v107_v35 = vld [vmem:[%s475_s2 + $0x28] sm:$0xf]  ;;  %237 = vst [vmem:[#allocation2] sm:$0xc] %v236_v30  ;;  %v240_v36 = vsel %vm422_vm11, %v137_v6, %v239_v31  ;;  %v172_v37 = vrot.slane %v170_v22, 6 }
  0x1b   :  { %242 = vst [vmem:[#allocation2 + $0xc] sm:$0xf] %v147_v32  ;;  %245 = vst [vmem:[#allocation2 + $0x10] sm:$0xc] %v244_v33  ;;  %v178_v38 = vrot.slane %v176_v23, 5  ;;  %v181_v39 = vrot.slane %v179_v29, 6 }
  0x1c   :  { %241 = vst [vmem:[#allocation2 + $0x8] sm:$0xc] %v240_v36  ;;  %v165_v40 = vsel %vm397_vm10, %v156_v34, %v164_v27  ;;  %v185_v42 = vshrl.u32 %v105_v19, 16  ;;  %v188_v43 = vshll.u32 %v105_v19, 16  ;;  %v194_v44 = vshrl.u32 %v106_v24, 16 }
  0x1d   :  { %246 = vst [vmem:[#allocation2 + $0x14] sm:$0xf] %v165_v40  ;;  %v173_v45 = vor.u32 %v172_v37, %v169_v28  ;;  %v182_v46 = vor.u32 %v181_v39, %v178_v38  ;;  %v197_v47 = vshll.u32 %v106_v24, 16  ;;  %v203_v48 = vshrl.u32 %v107_v35, 16  ;;  %v108_v49 = vld [vmem:[%s475_s2 + $0x2c] sm:$0x3] }
  0x1e   :  { %v187_v50 = vrot.slane %v185_v42, 5  ;;  %v190_v51 = vrot.slane %v188_v43, 6  ;;  %v196_v52 = vrot.slane %v194_v44, 5  ;;  %v206_v53 = vshll.u32 %v107_v35, 16  ;;  %v251_v57 = vld [vmem:[#allocation2 + $0x20] sm:$0xc] }
  0x1f   :  { %v248_v54 = vsel %vm422_vm11, %v173_v45, %v247_v41  ;;  %v174_v56 = vrot.slane %v173_v45, 4  ;;  %v199_v58 = vrot.slane %v197_v47, 6  ;;  %v205_v59 = vrot.slane %v203_v48, 5  ;;  %v255_v2 = vld [vmem:[#allocation2 + $0x28] sm:$0xc]  ;;  %s304_s2 = smov [#allocation2]  }
  0x20   :  { %249 = vst [vmem:[#allocation2 + $0x18] sm:$0xc] %v248_v54  ;;  %v191_v60 = vor.u32 %v190_v51, %v187_v50  ;;  %v208_v61 = vrot.slane %v206_v53, 6  ;;  %v212_v62 = vshrl.u32 %v108_v49, 16  ;;  %v215_v63 = vshll.u32 %v108_v49, 16  ;;  %s264_s23 = sshll.u32 %s304_s2, 4  ;;  %s265_s23 = int_to_ptr.vmem [resolvable:$true] %s264_s23 }
  0x21   :  { %v183_v0 = vsel %vm397_vm10, %v174_v56, %v182_v46  ;;  %v200_v1 = vor.u32 %v199_v58, %v196_v52  ;;  %s280_s24 = scalar_lea.vmem %s265_s23, 768  ;;  %p285_p1 = scmp.lt.s32.totalorder %s265_s23, %s265_s23 }
  0x22   :  { %250 = vst [vmem:[#allocation2 + $0x1c] sm:$0xf] %v183_v0  ;;  %v252_v3 = vsel %vm422_vm11, %v191_v60, %v251_v57  ;;  %v192_v4 = vrot.slane %v191_v60, 4  ;;  %v209_v5 = vor.u32 %v208_v61, %v205_v59  ;;  %v214_v6 = vrot.slane %v212_v62, 5  ;;  %p281_p0 = scmp.ne.s32.totalorder %s265_s23, %s280_s24  ;;  %p286_p2 = scmp.lt.s32.totalorder %s280_s24, %s280_s24 }
  0x23   :  { %253 = vst [vmem:[#allocation2 + $0x20] sm:$0xc] %v252_v3  ;;  %v217_v7 = vrot.slane %v215_v63, 6 }
  0x24   :  { %v201_v8 = vsel %vm397_vm10, %v192_v4, %v200_v1  ;;  %v256_v9 = vsel %vm422_vm11, %v209_v5, %v255_v2  ;;  %v210_v10 = vrot.slane %v209_v5, 4  ;;  %p287_p3 = por %p286_p2, %p285_p1 }
  0x25   :  { %254 = vst [vmem:[#allocation2 + $0x24] sm:$0xf] %v201_v8  ;;  %257 = vst [vmem:[#allocation2 + $0x28] sm:$0xc] %v256_v9  ;;  %v218_v11 = vor.u32 %v217_v7, %v214_v6 }
  0x26   :  { %p288_p4 = pnand %p287_p3, %p281_p0 }
  0x27   :  { %v219_v12 = vsel %vm397_vm10, %v210_v10, %v218_v11 }
  0x28   :  { %258 = vst [vmem:[#allocation2 + $0x2c] sm:$0xf] %v219_v12 }
  0x29   :  { %291 = shalt.err (!%p288_p4)
}
  0x2a   :  { %s292_s27 = scalar_lea.hbm %s476_s3, 768 }
  0x2b   :  { %p293_p5 = scmp.ne.s32.totalorder %s476_s3, %s292_s27  ;;  %p296_p6 = scmp.lt.u32.totalorder %s292_s27, %s476_s3 }
  0x2d   :  { %p298_p7 = pnand %p296_p6, %p293_p5 }
  0x2f   :  { %301 = shalt.err (!%p298_p7)
}
  0x30   :  { %s305_s1 = smov 64   ;;  %s306_s4 = smov 4  }
  0x31   :  { %270 = dma.vmem_to_hbm [thread:$0]  %s265_s23, 768, %s476_s3, [#allocation3], %s305_s1, %s305_s1, %s306_s4  }
  0x32   :  { %302 = dma.done.wait [#allocation3], 768  }
  0x33   :  { %303 = vsyncadd [#allocation3], 4294966528 }
  0x34   :  { %274 = vsyncpa [#allocation3], 1 }

</bundles_post_ra>
